<compile_context>
chip_gen: v7x
topology: tpu7x:2x2x1
jax: 0.10.0
libtpu: 0.0.40
codegen_flags: <defaults>
</compile_context>

<pallas_src>
import functools

import jax
import jax.numpy as jnp
from jax.experimental import pallas as pl
from jax.experimental.pallas import tpu as pltpu

LANES = 128      # lane width == fc1 hidden size
SUBLANES = 8     # f32 sublane tile


def actor_critic_kernel(x_ref, w_ref, out_ref, xs_ref, *, n_pol):
    """x_ref: (B, K) obs; w_ref: (8 + H + 8, H) packed weights; out: (8, H)."""
    B, K = x_ref.shape                         # (2, 4) real batch / features
    H = w_ref.shape[1]                         # 128
    Bp, Kp = xs_ref.shape                      # (8, 8) staging tile

    # Stage x into an aligned (8, 8) VMEM tile; lane K carries 1.0 for real
    # rows so fc1's bias (slab row K) is folded into the MXU accumulation.
    xs_ref[...] = jnp.zeros((Bp, Kp), jnp.float32)
    xs_ref[0:B, 0:K] = x_ref[...]
    xs_ref[0:B, K:K + 1] = jnp.ones((B, 1), jnp.float32)

    # fc1 (+ folded b1) + ReLU: one aligned (8, 8) @ (8, 128) MXU push.
    h = jnp.dot(xs_ref[...], w_ref[0:Kp, :],
                preferred_element_type=jnp.float32,
                precision=jax.lax.Precision.HIGHEST)
    h = jnp.maximum(h, 0.0)                                    # (8, 128)

    # Fused policy + value head: lane-dense (8, 128) @ (128, 128) matmul.
    # Columns [0:n_pol] = policy logits, column n_pol = value, rest zero pad.
    head = jnp.dot(h, w_ref[Kp:Kp + H, :],
                   preferred_element_type=jnp.float32,
                   precision=jax.lax.Precision.HIGHEST)
    head = head + w_ref[Kp + H:Kp + H + 1, :]                  # fused head bias

    row = jax.lax.broadcasted_iota(jnp.int32, head.shape, 0)
    col = jax.lax.broadcasted_iota(jnp.int32, head.shape, 1)

    # softmax over dim=0 (batch axis), per column, excluding padded batch rows
    # — matches F.softmax(pol, dim=0) exactly for the real rows.
    logits = jnp.where(row < B, head, -jnp.inf)
    m = jnp.max(logits, axis=0, keepdims=True)
    e = jnp.exp(logits - m)                    # padded rows -> exp(-inf) = 0
    s = jnp.sum(e, axis=0, keepdims=True)
    # Exact reciprocal. approx=True would take the EUP vrcp fast path but
    # risks the 1e-5 comparison tolerance, so keep the exact divide sequence.
    sm = e * pl.reciprocal(s, approx=False)

    # Policy columns get the softmax; value (and pad) columns keep raw head.
    out = jnp.where(col < n_pol, sm, head)
    out_ref[...] = out.astype(out_ref.dtype)


def pack_actor_critic_params(w1, b1, wpi, bpi, wv, bv):
    """One-time (hoisted out of the step loop) packing of all weights into a
    single lane-dense (8 + H + 8, H) f32 slab:

      rows [0:K]     w1  (K, H)       fc1 weight
      row  [K]       b1  (H,)         fc1 bias (folded into the matmul)
      rows [K+1:8]   zero pad
      rows [8:8+H]   fused head (H,H) cols [0:n_pol]=Wpi, col n_pol=Wv
      row  [8+H]     fused head bias  cols [0:n_pol]=bpi, col n_pol=bv
      rows [8+H+1:]  zero pad
    """
    K, H = w1.shape
    n_pol = wpi.shape[1]
    n_v = wv.shape[1]
    assert K + 1 <= SUBLANES and H == LANES and n_pol + n_v <= H
    slab = jnp.zeros((SUBLANES + H + SUBLANES, H), jnp.float32)
    slab = slab.at[0:K, :].set(w1)
    slab = slab.at[K, :].set(b1.reshape(H))
    slab = slab.at[SUBLANES:SUBLANES + H, 0:n_pol].set(wpi)
    slab = slab.at[SUBLANES:SUBLANES + H, n_pol:n_pol + n_v].set(wv)
    slab = slab.at[SUBLANES + H, 0:n_pol].set(bpi.reshape(n_pol))
    slab = slab.at[SUBLANES + H, n_pol:n_pol + n_v].set(bv.reshape(n_v))
    return slab


def actor_critic_forward(x, slab, *, n_pol=2, n_v=1):
    """x: (B, 4) f32 observations; slab: packed weights from pack_...()."""
    B, K = x.shape
    H = slab.shape[1]
    assert B <= SUBLANES and K + 1 <= SUBLANES   # single-tile fast path
    vmem = pl.BlockSpec(memory_space=pltpu.MemorySpace.VMEM)
    out = pl.pallas_call(
        functools.partial(actor_critic_kernel, n_pol=n_pol),
        out_shape=jax.ShapeDtypeStruct((SUBLANES, H), jnp.float32),
        in_specs=[vmem, vmem],                   # exactly 2 input DMAs: x, slab
        out_specs=vmem,
        scratch_shapes=[pltpu.VMEM((SUBLANES, SUBLANES), jnp.float32)],
    )(x, slab)
    pi = out[:B, :n_pol]
    v = out[:B, n_pol:n_pol + n_v]
    return pi, v


def init_params(key):
    """Deterministic synthetic init matching nn.Linear shapes.

    fc1:   Linear(4, 128)  -> W1  (4, 128),  b1  (1, 128)
    fc_pi: Linear(128, 2)  -> Wpi (128, 2),  bpi (1, 2)
    fc_v:  Linear(128, 1)  -> Wv  (128, 1),  bv  (1, 1)
    (stored transposed relative to PyTorch's (out, in) convention)
    """
    k1, k2, k3, k4, k5, k6 = jax.random.split(key, 6)
    w1 = jax.random.normal(k1, (4, 128), jnp.float32) * 0.1
    b1 = jax.random.normal(k2, (1, 128), jnp.float32) * 0.1
    wpi = jax.random.normal(k3, (128, 2), jnp.float32) * 0.1
    bpi = jax.random.normal(k4, (1, 2), jnp.float32) * 0.1
    wv = jax.random.normal(k5, (128, 1), jnp.float32) * 0.1
    bv = jax.random.normal(k6, (1, 1), jnp.float32) * 0.1
    return w1, b1, wpi, bpi, wv, bv


def reference_forward(x, w1, b1, wpi, bpi, wv, bv):
    prec = jax.lax.Precision.HIGHEST
    h = jnp.maximum(jnp.dot(x, w1, precision=prec) + b1, 0.0)
    pol = jnp.dot(h, wpi, precision=prec) + bpi
    pi = jax.nn.softmax(pol, axis=0)   # dim=0, as in the PyTorch module
    v = jnp.dot(h, wv, precision=prec) + bv
    return pi, v


if __name__ == "__main__":
    key = jax.random.PRNGKey(0)
    kx, kp = jax.random.split(key)

    # small batch of CartPole-like 4-dim observations
    x = jax.random.normal(kx, (2, 4), jnp.float32)
    params = init_params(kp)

    # weight packing happens ONCE (hoisted out of the per-step path)
    slab = pack_actor_critic_params(*params)
    fwd = jax.jit(actor_critic_forward)          # per-step path: x + slab only

    pi, v = fwd(x, slab)
    jax.block_until_ready((pi, v))

    pi_ref, v_ref = reference_forward(x, *params)
    assert pi.shape == (2, 2) and v.shape == (2, 1)
    assert jnp.allclose(pi, pi_ref, atol=1e-5, rtol=1e-5)
    assert jnp.allclose(v, v_ref, atol=1e-5, rtol=1e-5)
    # softmax over dim=0: each column of pi sums to 1
    assert jnp.allclose(jnp.sum(pi, axis=0), jnp.ones((2,)), atol=1e-5)

    print("KERNEL_OK")
</pallas_src>

<mosaic_0001>
module attributes {stable_mosaic.version = 11 : i64} {
  func.func @actor_critic_kernel(%arg0: memref<2x4xf32, #tpu.memory_space<vmem>>, %arg1: memref<144x128xf32, #tpu.memory_space<vmem>>, %arg2: memref<8x128xf32, #tpu.memory_space<vmem>>, %arg3: memref<8x8xf32, #tpu.memory_space<vmem>>) attributes {dimension_semantics = [], scalar_prefetch = 0 : i64, scratch_operands = 1 : i64, tpu.core_type = #tpu.core_type<tc>} {
    %cst = arith.constant 0.000000e+00 : f32
    %0 = vector.broadcast %cst : f32 to vector<8x8xf32>
    %c0 = arith.constant 0 : index
    %c0_0 = arith.constant 0 : index
    %1 = vector.load %arg3[%c0, %c0_0] : memref<8x8xf32, #tpu.memory_space<vmem>>, vector<8x8xf32>
    tpu.vector_store %arg3[%c0, %c0_0], %0 {strides = array<i32>} : memref<8x8xf32, #tpu.memory_space<vmem>>, vector<8x8xf32>,
    %c0_1 = arith.constant 0 : index
    %c0_2 = arith.constant 0 : index
    %2 = vector.load %arg0[%c0_1, %c0_2] : memref<2x4xf32, #tpu.memory_space<vmem>>, vector<2x4xf32>
    %c0_3 = arith.constant 0 : index
    %c0_4 = arith.constant 0 : index
    %3 = vector.load %arg3[%c0_3, %c0_4] : memref<8x8xf32, #tpu.memory_space<vmem>>, vector<2x4xf32>
    tpu.vector_store %arg3[%c0_3, %c0_4], %2 {strides = array<i32>} : memref<8x8xf32, #tpu.memory_space<vmem>>, vector<2x4xf32>,
    %cst_5 = arith.constant 1.000000e+00 : f32
    %4 = vector.broadcast %cst_5 : f32 to vector<2x1xf32>
    %c0_6 = arith.constant 0 : index
    %c4 = arith.constant 4 : index
    %5 = vector.load %arg3[%c0_6, %c4] : memref<8x8xf32, #tpu.memory_space<vmem>>, vector<2x1xf32>
    tpu.vector_store %arg3[%c0_6, %c4], %4 {strides = array<i32>} : memref<8x8xf32, #tpu.memory_space<vmem>>, vector<2x1xf32>,
    %c0_7 = arith.constant 0 : index
    %c0_8 = arith.constant 0 : index
    %6 = vector.load %arg3[%c0_7, %c0_8] : memref<8x8xf32, #tpu.memory_space<vmem>>, vector<8x8xf32>
    %c0_9 = arith.constant 0 : index
    %c0_10 = arith.constant 0 : index
    %7 = vector.load %arg1[%c0_9, %c0_10] : memref<144x128xf32, #tpu.memory_space<vmem>>, vector<8x128xf32>
    %cst_11 = arith.constant dense<0.000000e+00> : vector<8x128xf32>
    %8 = tpu.matmul %6, %7, %cst_11 {dimension_numbers = #tpu.dot_dimension_numbers<[1], [0], [0], [1], [0, 0, 1, 1], [], []>, precision = #tpu.contract_precision<fp32>} : vector<8x8xf32>, vector<8x128xf32>, vector<8x128xf32> -> vector<8x128xf32>
    %cst_12 = arith.constant 0.000000e+00 : f32
    %9 = vector.broadcast %cst_12 : f32 to vector<8x128xf32>
    %10 = arith.maximumf %8, %9 : vector<8x128xf32>
    %c8 = arith.constant 8 : index
    %c0_13 = arith.constant 0 : index
    %11 = vector.load %arg1[%c8, %c0_13] : memref<144x128xf32, #tpu.memory_space<vmem>>, vector<128x128xf32>
    %cst_14 = arith.constant dense<0.000000e+00> : vector<8x128xf32>
    %12 = tpu.matmul %10, %11, %cst_14 {dimension_numbers = #tpu.dot_dimension_numbers<[1], [0], [0], [1], [0, 0, 1, 1], [], []>, precision = #tpu.contract_precision<fp32>} : vector<8x128xf32>, vector<128x128xf32>, vector<8x128xf32> -> vector<8x128xf32>
    %c136 = arith.constant 136 : index
    %c0_15 = arith.constant 0 : index
    %13 = vector.load %arg1[%c136, %c0_15] : memref<144x128xf32, #tpu.memory_space<vmem>>, vector<1x128xf32>
    %14 = vector.broadcast %13 : vector<1x128xf32> to vector<8x128xf32>
    %15 = arith.addf %12, %14 : vector<8x128xf32>
    %16 = tpu.iota {dimensions = array<i32: 0>} : vector<8x128xi32>
    %17 = tpu.iota {dimensions = array<i32: 1>} : vector<8x128xi32>
    %c2_i32 = arith.constant 2 : i32
    %18 = vector.broadcast %c2_i32 : i32 to vector<8x128xi32>
    %19 = arith.cmpi slt, %16, %18 : vector<8x128xi32>
    %cst_16 = arith.constant 0xFF800000 : f32
    %20 = vector.broadcast %cst_16 : f32 to vector<8x128xf32>
    %21 = arith.select %19, %15, %20 : vector<8x128xi1>, vector<8x128xf32>
    %cst_17 = arith.constant dense<0xFF800000> : vector<128xf32>
    %22 = vector.multi_reduction <maximumf>, %21, %cst_17 [0] : vector<8x128xf32> to vector<128xf32>
    %23 = vector.shape_cast %22 : vector<128xf32> to vector<1x128xf32>
    %24 = vector.broadcast %23 : vector<1x128xf32> to vector<8x128xf32>
    %25 = arith.subf %21, %24 : vector<8x128xf32>
    %26 = math.exp %25 : vector<8x128xf32>
    %cst_18 = arith.constant dense<0.000000e+00> : vector<128xf32>
    %27 = vector.multi_reduction <add>, %26, %cst_18 [0] : vector<8x128xf32> to vector<128xf32>
    %28 = vector.shape_cast %27 : vector<128xf32> to vector<1x128xf32>
    %29 = tpu.reciprocal %28 : vector<1x128xf32> -> vector<1x128xf32>
    %30 = vector.broadcast %29 : vector<1x128xf32> to vector<8x128xf32>
    %31 = arith.mulf %26, %30 : vector<8x128xf32>
    %c2_i32_19 = arith.constant 2 : i32
    %32 = vector.broadcast %c2_i32_19 : i32 to vector<8x128xi32>
    %33 = arith.cmpi slt, %17, %32 : vector<8x128xi32>
    %34 = arith.select %33, %31, %15 : vector<8x128xi1>, vector<8x128xf32>
    %c0_20 = arith.constant 0 : index
    %c0_21 = arith.constant 0 : index
    %35 = vector.load %arg2[%c0_20, %c0_21] : memref<8x128xf32, #tpu.memory_space<vmem>>, vector<8x128xf32>
    tpu.vector_store %arg2[%c0_20, %c0_21], %34 {strides = array<i32>} : memref<8x128xf32, #tpu.memory_space<vmem>>, vector<8x128xf32>,
    return
  }
}

</mosaic_0001>

<bundles_post_ra>
// kernel: actor_critic_forward.1
= control target key start
LH: loop header
LB: loop body
LE: loop exit
PB: predicated region body
PF: predicated region fallthrough
CT: control target
= control target key end

     0   :  { %7 = vsyncpa [#allocation4], 0  ;;  %s2131_s0 = inlined_call_operand.hbm [shape: f32[2,4], index: 0, kind: input, shape index: {}]   ;;  %s2132_s1 = inlined_call_operand.hbm [shape: f32[144,128], index: 1, kind: input, shape index: {}]   ;;  %s2133_s2 = inlined_call_operand.vmem [shape: f32[8,128], index: 2, kind: output, shape index: {}]  }
   0x1   :  { %8 = vsyncpa [#allocation6], 0  ;;  %s1768_s9 = smov [#allocation3]   ;;  %s1769_s11 = smov [#allocation5]  }
   0x2   :  { %s15_s10 = sshll.u32 %s1768_s9, 4  ;;  %s24_s12 = sshll.u32 %s1769_s11, 4  ;;  %s16_s10 = int_to_ptr.vmem [resolvable:$true] %s15_s10  ;;  %s1791_s12 = int_to_ptr.vmem [resolvable:$true] %s24_s12 }
   0x3   :  { %s1720_s15 = scalar_lea.hbm %s2131_s0, 32 }
   0x4   :  { %p1721_p0 = scmp.ne.s32.totalorder %s2131_s0, %s1720_s15  ;;  %p1724_p1 = scmp.lt.u32.totalorder %s1720_s15, %s2131_s0 }
   0x6   :  { %p1726_p2 = pnand %p1724_p1, %p1721_p0 }
   0x8   :  { %1729 = shalt.err (!%p1726_p2)
}
   0x9   :  { %s1730_s20 = scalar_lea.vmem %s16_s10, 32  ;;  %p1735_p4 = scmp.lt.s32.totalorder %s16_s10, %s16_s10 }
   0xa   :  { %p1731_p3 = scmp.ne.s32.totalorder %s16_s10, %s1730_s20  ;;  %p1736_p5 = scmp.lt.s32.totalorder %s1730_s20, %s1730_s20 }
   0xc   :  { %p1737_p6 = por %p1736_p5, %p1735_p4 }
   0xe   :  { %p1738_p7 = pnand %p1737_p6, %p1731_p3 }
  0x10   :  { %1741 = shalt.err (!%p1738_p7)
}
  0x11   :  { %18 = dma.hbm_to_vmem [thread:$0]  %s2131_s0, 32, %s16_s10, [#allocation4]  }
  0x12   :  { %s1742_s25 = scalar_lea.hbm %s2132_s1, 2304 }
  0x13   :  { %p1743_p8 = scmp.ne.s32.totalorder %s2132_s1, %s1742_s25  ;;  %p1746_p9 = scmp.lt.u32.totalorder %s1742_s25, %s2132_s1 }
  0x15   :  { %p1748_p10 = pnand %p1746_p9, %p1743_p8 }
  0x17   :  { %1751 = shalt.err (!%p1748_p10)
}
  0x18   :  { %s1752_s30 = scalar_lea.vmem %s1791_s12, 2304  ;;  %p1757_p12 = scmp.lt.s32.totalorder %s1791_s12, %s1791_s12 }
  0x19   :  { %p1753_p11 = scmp.ne.s32.totalorder %s1791_s12, %s1752_s30  ;;  %p1758_p13 = scmp.lt.s32.totalorder %s1752_s30, %s1752_s30 }
  0x1b   :  { %p1759_p0 = por %p1758_p13, %p1757_p12 }
  0x1d   :  { %p1760_p1 = pnand %p1759_p0, %p1753_p11 }
  0x1f   :  { %1763 = shalt.err (!%p1760_p1)
}
  0x20   :  { %s1770_s0 = smov 128   ;;  %s1771_s3 = smov 8  }
  0x21   :  { %30 = dma.hbm_to_vmem [thread:$0]  %s2132_s1, 2304, %s1791_s12, [#allocation6], %s1770_s0, %s1770_s0, %s1771_s3  }
  0x22   :  { %1764 = dma.done.wait [#allocation4], 32  }
  0x23   :  { %1765 = vsyncadd [#allocation4], 4294967264 }
  0x24   :  { %1766 = dma.done.wait [#allocation6], 2304  }
  0x25   :  { %1767 = vsyncadd [#allocation6], 4294964992  ;;  %vm37_vm0 = vcmask 64512   ;;  %v1772_v0 = vmov 0.0   ;;  %vm1773_vm1 = vmmov 0   ;;  %vm40_vm2 = vcmask 25600  }
  0x26   :  { %1320 = vmatprep.subr.mxu0 %v1772_v0  ;;  %1322 = vmatprep.mubr.msk.f32.mxu0 %vm1773_vm1, %v1772_v0  ;;  %38 = vst.msk [vmem:[#allocation2] sm:$0xff] %vm37_vm0, %v1772_v0  ;;  %vm42_vm3 = vcmask 33824   ;;  %v45_v1 = vld [vmem:[#allocation5] sm:$0xff]  ;;  %v39_v2 = vld [vmem:[#allocation3] sm:$0x3]  ;;  %v1830_v3 = vld [vmem:[#allocation5 + $0x8] sm:$0xff] }
  0x27   :  { %1305 = vmatprep.subr.mxu1 %v1772_v0  ;;  %1307 = vmatprep.mubr.msk.f32.mxu1 %vm1773_vm1, %v1772_v0  ;;  %v50_v4 = vand.u32 4294901760, %v45_v1  ;;  %41 = vst.msk [vmem:[#allocation2] sm:$0x3] %vm40_vm2, %v39_v2  ;;  %v1832_v5 = vld [vmem:[#allocation5 + $0x10] sm:$0xff]  ;;  %v518_v6 = vand.u32 4294901760, %v1830_v3  ;;  %v1835_v7 = vld [vmem:[#allocation5 + $0x18] sm:$0xff] }
  0x28   :  { %v1837_v8 = vld [vmem:[#allocation5 + $0x20] sm:$0xff]  ;;  %v1774_v9 = vmov 1.0   ;;  %v521_v10 = vand.u32 4294901760, %v1832_v5  ;;  %v1840_v11 = vld [vmem:[#allocation5 + $0x28] sm:$0xff]  ;;  %v1842_v12 = vld [vmem:[#allocation5 + $0x30] sm:$0xff]  ;;  %v524_v15 = vand.u32 4294901760, %v1835_v7 }
  0x29   :  { %43 = vst.msk [vmem:[#allocation2] sm:$0x3] %vm42_vm3, %v1774_v9  ;;  %v1844_v13 = vld [vmem:[#allocation5 + $0x38] sm:$0xff]  ;;  %1321 = vmatpush3.msra.mxu0 %v50_v4  ;;  %1306 = vmatpush3.msra.mxu1 %v50_v4  ;;  %v1847_v14 = vsub.f32 %v1830_v3, %v518_v6  ;;  %v527_v16 = vand.u32 4294901760, %v1837_v8  ;;  %v1851_v17 = vld [vmem:[#allocation5 + $0x40] sm:$0xff]  ;;  %v530_v19 = vand.u32 4294901760, %v1840_v11  ;;  %v127_v24 = vsub.f32 %v45_v1, %v50_v4 }
  0x2a   :  { %1310 = vmatprep.subr.mxu1 %v1772_v0  ;;  %1325 = vmatprep.subr.mxu0 %v1772_v0  ;;  %v1856_v18 = vsub.f32 %v1832_v5, %v521_v10  ;;  %v533_v20 = vand.u32 4294901760, %v1842_v12  ;;  %v536_v21 = vand.u32 4294901760, %v1844_v13  ;;  %v1861_v22 = vld [vmem:[#allocation5 + $0x48] sm:$0xff]  ;;  %v1863_v23 = vld [vmem:[#allocation5 + $0x50] sm:$0xff]  ;;  %v1866_v25 = vsub.f32 %v1835_v7, %v524_v15  ;;  %v506_v52 = vld [vmem:[#allocation5 + $0x58] sm:$0xff] }
  0x2b   :  { %v1869_v26 = vsub.f32 %v1837_v8, %v527_v16  ;;  %v1872_v27 = vsub.f32 %v1840_v11, %v530_v19  ;;  %v539_v29 = vand.u32 4294901760, %v1851_v17  ;;  %v542_v31 = vand.u32 4294901760, %v1861_v22  ;;  %v507_v53 = vld [vmem:[#allocation5 + $0x60] sm:$0xff]  ;;  %v508_v59 = vld [vmem:[#allocation5 + $0x68] sm:$0xff]  ;;  %v509_v60 = vld [vmem:[#allocation5 + $0x70] sm:$0xff] }
  0x2c   :  { %v1875_v28 = vsub.f32 %v1842_v12, %v533_v20  ;;  %v1879_v30 = vsub.f32 %v1844_v13, %v536_v21  ;;  %v545_v32 = vand.u32 4294901760, %v1863_v23  ;;  %v128_v38 = vand.u32 4294901760, %v127_v24  ;;  %v510_v1 = vld [vmem:[#allocation5 + $0x78] sm:$0xff]  ;;  %v511_v2 = vld [vmem:[#allocation5 + $0x80] sm:$0xff] }
  0x2d   :  { %v1884_v33 = vsub.f32 %v1851_v17, %v539_v29  ;;  %v1887_v35 = vsub.f32 %v1861_v22, %v542_v31  ;;  %v1775_v46 = vmov 0.0|0.0   ;;  %v1905_v47 = vpack.c.bf16 %v521_v10, %v518_v6 }
  0x2e   :  { %v1890_v36 = vsub.f32 %v1863_v23, %v545_v32  ;;  %v129_v41 = vsub.f32 %v127_v24, %v128_v38  ;;  %v1911_v48 = vpack.c.bf16 %v527_v16, %v524_v15  ;;  %v1917_v49 = vpack.c.bf16 %v533_v20, %v530_v19 }
  0x2f   :  { %v1925_v50 = vpack.c.bf16 %v539_v29, %v536_v21  ;;  %v1931_v51 = vpack.c.bf16 %v545_v32, %v542_v31  ;;  %v548_v54 = vand.u32 4294901760, %v506_v52  ;;  %v551_v55 = vand.u32 4294901760, %v507_v53 }
  0x30   :  { %v44_v34 = vld [vmem:[#allocation2] sm:$0xff]  ;;  %v130_v44 = vand.u32 4294901760, %v129_v41  ;;  %v554_v61 = vand.u32 4294901760, %v508_v59  ;;  %v557_v62 = vand.u32 4294901760, %v509_v60  ;;  %v560_v3 = vand.u32 4294901760, %v510_v1 }
  0x31   :  { %v47_v37 = vsel %vm37_vm0, %v44_v34, 0  ;;  %v1939_v56 = vpack.c.bf16 %v551_v55, %v548_v54  ;;  %v1941_v57 = vsub.f32 %v506_v52, %v548_v54  ;;  %v1943_v58 = vsub.f32 %v507_v53, %v551_v55 }
  0x32   :  { %v115_v39 = vand.u32 4294901760, %v47_v37  ;;  %v1949_v63 = vpack.c.bf16 %v557_v62, %v554_v61  ;;  %v611_v6 = vand.u32 4294901760, %v1847_v14  ;;  %v618_v7 = vand.u32 4294901760, %v1856_v18 }
  0x33   :  { %v1967_v11 = vsub.f32 %v508_v59, %v554_v61  ;;  %v1969_v12 = vsub.f32 %v509_v60, %v557_v62  ;;  %v1971_v13 = vsub.f32 %v510_v1, %v560_v3  ;;  %v625_v19 = vand.u32 4294901760, %v1866_v25 }
  0x34   :  { %v116_v40 = vsub.f32 %v47_v37, %v115_v39  ;;  %v1963_v8 = vpack.c.bf16 %v618_v7, %v611_v6  ;;  %v612_v9 = vsub.f32 %v1847_v14, %v611_v6  ;;  %v619_v10 = vsub.f32 %v1856_v18, %v618_v7 }
  0x35   :  { %v632_v20 = vand.u32 4294901760, %v1869_v26  ;;  %v626_v23 = vsub.f32 %v1866_v25, %v625_v19  ;;  %v639_v32 = vand.u32 4294901760, %v1872_v27  ;;  %v646_v34 = vand.u32 4294901760, %v1875_v28 }
  0x36   :  { %v117_v42 = vand.u32 4294901760, %v116_v40  ;;  %v613_v16 = vand.u32 4294901760, %v612_v9  ;;  %v620_v17 = vand.u32 4294901760, %v619_v10  ;;  %v667_v60 = vand.u32 4294901760, %v1887_v35 }
  0x37   :  { %v1979_v22 = vpack.c.bf16 %v632_v20, %v625_v19  ;;  %v627_v29 = vand.u32 4294901760, %v626_v23  ;;  %v674_v61 = vand.u32 4294901760, %v1890_v36  ;;  %v681_v7 = vand.u32 4294901760, %v1941_v57 }
  0x38   :  { %1323 = vmatmul.mubr.f32.vlgmr.msra.gmra.mrb[0].mxu0 %v117_v42  ;;  %v118_v43 = vsub.f32 %v116_v40, %v117_v42  ;;  %v1977_v21 = vpack.c.bf16 %v620_v17, %v613_v16  ;;  %v688_v9 = vand.u32 4294901760, %v1943_v58 }
  0x39   :  { %1326 = vmatpush3.msra.mxu0 %v128_v38  ;;  %1327 = vmatprep.mubr.msk.f32.mxu0 %vm1773_vm1, %v1772_v0  ;;  %v1987_v38 = vpack.c.bf16 %v646_v34, %v639_v32  ;;  %v2003_v1 = vpack.c.bf16 %v674_v61, %v667_v60  ;;  %v682_v17 = vsub.f32 %v1941_v57, %v681_v7 }
  0x3a   :  { %v119_v45 = vand.u32 4294901760, %v118_v43  ;;  %1330 = vmatprep.subr.mxu0 %v1772_v0  ;;  %v653_v43 = vand.u32 4294901760, %v1879_v30  ;;  %v2011_v16 = vpack.c.bf16 %v688_v9, %v681_v7  ;;  %v689_v19 = vsub.f32 %v1943_v58, %v688_v9 }
  0x3b   :  { %v1606_v7 = vpack.c.bf16 %v1890_v36, %v1887_v35  ;;  %v1609_v9 = vpack.c.bf16 %v1943_v58, %v1941_v57 }
  0x3c   :  { %1308 = vmatmul.mubr.f32.vlgmr.msra.gmra.mrb[0].mxu1 %v119_v45  ;;  %v654_v53 = vsub.f32 %v1879_v30, %v653_v43  ;;  %v690_v23 = vand.u32 4294901760, %v689_v19 }
  0x3d   :  { %1311 = vmatpush3.msra.mxu1 %v130_v44  ;;  %1312 = vmatprep.mubr.msk.f32.mxu1 %vm1773_vm1, %v1772_v0  ;;  %v660_v44 = vand.u32 4294901760, %v1884_v33 }
  0x3e   :  { %1315 = vmatprep.subr.mxu1 %v1772_v0  ;;  %v655_v55 = vand.u32 4294901760, %v654_v53 }
  0x3f   :  { %v1995_v52 = vpack.c.bf16 %v660_v44, %v653_v43  ;;  %v661_v54 = vsub.f32 %v1884_v33, %v660_v44 }
  0x40   :  { %1328 = vmatmul.mubr.f32.vlgmr.msra.gmra.mrb[0].mxu0 %v115_v39 }
  0x41   :  { %1331 = vmatpush3.msra.mxu0 %v50_v4  ;;  %1332 = vmatprep.mubr.msk.f32.mxu0 %vm1773_vm1, %v1772_v0  ;;  %v563_v4 = vand.u32 4294901760, %v511_v2  ;;  %v662_v59 = vand.u32 4294901760, %v661_v54 }
  0x42   :  { %1545 = vmatprep.subr.bf16.mxu0 %v1775_v46 }
  0x43   :  { %v1955_v5 = vpack.c.bf16 %v563_v4, %v560_v3  ;;  %v1973_v15 = vsub.f32 %v511_v2, %v563_v4  ;;  %v2001_v62 = vpack.c.bf16 %v662_v59, %v655_v55  ;;  %v668_v2 = vsub.f32 %v1887_v35, %v667_v60 }
  0x44   :  { %1313 = vmatmul.mubr.f32.vlgmr.msra.gmra.mrb[0].mxu1 %v115_v39  ;;  %v675_v3 = vsub.f32 %v1890_v36, %v674_v61 }
  0x45   :  { %1316 = vmatpush3.msra.mxu1 %v127_v24  ;;  %1317 = vmatprep.mubr.msk.f32.mxu1 %vm1773_vm1, %v1772_v0  ;;  %v633_v24 = vsub.f32 %v1869_v26, %v632_v20  ;;  %v669_v4 = vand.u32 4294901760, %v668_v2  ;;  %v683_v20 = vand.u32 4294901760, %v682_v17  ;;  %v716_v43 = vand.u32 4294901760, %v1973_v15 }
  0x46   :  { %1617 = vmatprep.subr.bf16.mxu1 %v1775_v46  ;;  %v676_v6 = vand.u32 4294901760, %v675_v3  ;;  %v1594_v2 = vpack.c.bf16 %v1856_v18, %v1847_v14  ;;  %v1597_v3 = vpack.c.bf16 %v1869_v26, %v1866_v25  ;;  %v1612_v17 = vpack.c.bf16 %v1969_v12, %v1967_v11 }
  0x47   :  { %v634_v31 = vand.u32 4294901760, %v633_v24  ;;  %v695_v24 = vand.u32 4294901760, %v1967_v11  ;;  %v717_v55 = vsub.f32 %v1973_v15, %v716_v43  ;;  %v1615_v14 = vpack.c.bf16 %v1973_v15, %v1971_v13 }
  0x48   :  { %1333 = vmatmul.mubr.f32.vlgmr.msra.gmra.mrb[0].mxu0 %v115_v39  ;;  %v640_v39 = vsub.f32 %v1872_v27, %v639_v32  ;;  %v2009_v10 = vpack.c.bf16 %v676_v6, %v669_v4  ;;  %v1600_v4 = vpack.c.bf16 %v1875_v28, %v1872_v27  ;;  %v1603_v6 = vpack.c.bf16 %v1884_v33, %v1879_v30  ;;  %v1190_v27 = vld [vmem:[#allocation5 + $0x88] ss:$0 sm:$0xff] }
  0x49   :  { %1547 = vmatpush3.bf16.msra.mxu0 %v1905_v47  ;;  %1367 = vmatprep.mubr.msk.f32.mxu0 %vm1773_vm1, %v1772_v0  ;;  %v1985_v37 = vpack.c.bf16 %v634_v31, %v627_v29  ;;  %v702_v29 = vand.u32 4294901760, %v1969_v12  ;;  %v1585_v31 = vpack.c.bf16 %v690_v23, %v683_v20  ;;  %v718_v60 = vand.u32 4294901760, %v717_v55 }
  0x4a   :  { %1548 = vmatprep.subr.bf16.mxu0 %v1775_v46  ;;  %v641_v41 = vand.u32 4294901760, %v640_v39 }
  0x4b   :  { %v1660_v32 = vpack.c.bf16 %v702_v29, %v695_v24  ;;  %v703_v39 = vsub.f32 %v1969_v12, %v702_v29 }
  0x4c   :  { %1318 = vmatmul.mubr.f32.vlgmr.msra.gmra.mrb[0].mxu1 %v116_v40  ;;  %v647_v40 = vsub.f32 %v1875_v28, %v646_v34  ;;  %v696_v34 = vsub.f32 %v1967_v11, %v695_v24 }
  0x4d   :  { %1619 = vmatpush3.bf16.msra.mxu1 %v1905_v47  ;;  %1550 = vmatpush3.bf16.msra.mxu0 %v1911_v48 }
  0x4e   :  { %1620 = vmatprep.subr.bf16.mxu1 %v1775_v46  ;;  %1551 = vmatprep.subr.bf16.mxu0 %v1775_v46  ;;  %v648_v42 = vand.u32 4294901760, %v647_v40  ;;  %v697_v40 = vand.u32 4294901760, %v696_v34 }
  0x4f   :  { %1472 = vmatprep.mubr.msk.f32.mxu1 %vm1773_vm1, %v1772_v0 }
  0x50   :  { %v1993_v45 = vpack.c.bf16 %v648_v42, %v641_v41  ;;  %v704_v41 = vand.u32 4294901760, %v703_v39  ;;  %v709_v42 = vand.u32 4294901760, %v1971_v13 }
  0x51   :  { %1622 = vmatpush3.bf16.msra.mxu1 %v1911_v48  ;;  %1553 = vmatpush3.bf16.msra.mxu0 %v1917_v49 }
  0x52   :  { %1623 = vmatprep.subr.bf16.mxu1 %v1775_v46  ;;  %1554 = vmatprep.subr.bf16.mxu0 %v1775_v46  ;;  %v1588_v44 = vpack.c.bf16 %v704_v41, %v697_v40  ;;  %v1663_v53 = vpack.c.bf16 %v716_v43, %v709_v42  ;;  %v710_v54 = vsub.f32 %v1971_v13, %v709_v42 }
  0x54   :  { %v711_v59 = vand.u32 4294901760, %v710_v54 }
  0x55   :  { %1625 = vmatpush3.bf16.msra.mxu1 %v1917_v49  ;;  %1556 = vmatpush3.bf16.msra.mxu0 %v1925_v50 }
  0x56   :  { %1626 = vmatprep.subr.bf16.mxu1 %v1775_v46  ;;  %1557 = vmatprep.subr.bf16.mxu0 %v1775_v46  ;;  %v1591_v61 = vpack.c.bf16 %v718_v60, %v711_v59 }
  0x59   :  { %1628 = vmatpush3.bf16.msra.mxu1 %v1925_v50  ;;  %1559 = vmatpush3.bf16.msra.mxu0 %v1931_v51 }
  0x5a   :  { %1629 = vmatprep.subr.bf16.mxu1 %v1775_v46  ;;  %1560 = vmatprep.subr.bf16.mxu0 %v1775_v46 }
  0x5d   :  { %1631 = vmatpush3.bf16.msra.mxu1 %v1931_v51  ;;  %1562 = vmatpush3.bf16.msra.mxu0 %v1939_v56 }
  0x5e   :  { %1632 = vmatprep.subr.bf16.mxu1 %v1775_v46  ;;  %1563 = vmatprep.subr.bf16.mxu0 %v1775_v46 }
  0x61   :  { %1634 = vmatpush3.bf16.msra.mxu1 %v1939_v56  ;;  %1565 = vmatpush3.bf16.msra.mxu0 %v1949_v63 }
  0x62   :  { %1635 = vmatprep.subr.bf16.mxu1 %v1775_v46  ;;  %1566 = vmatprep.subr.bf16.mxu0 %v1775_v46 }
  0x65   :  { %1637 = vmatpush3.bf16.msra.mxu1 %v1949_v63  ;;  %1568 = vmatpush3.bf16.msra.mxu0 %v1955_v5 }
  0x66   :  { %1638 = vmatprep.subr.bf16.mxu1 %v1775_v46  ;;  %1569 = vmatprep.subr.bf16.mxu0 %v1775_v46 }
  0x69   :  { %1640 = vmatpush3.bf16.msra.mxu1 %v1955_v5 }
  0x6a   :  { %1641 = vmatprep.subr.bf16.mxu1 %v1775_v46 }
 0x11b   :  { %v491_v18 = vpop.f32.mrb[0].mxu0 }
 0x11c   :  { %v1334_v19 = vpop.f32.mrb[1].mxu0 }
 0x11f   :  { %v271_v20 = vpop.f32.mrb[0].mxu1 }
 0x120   :  { %v1689_v23 = vadd.f32 %v491_v18, %v271_v20  ;;  %v1319_v24 = vpop.f32.mrb[1].mxu1 }
 0x122   :  { %v495_v29 = vmax.f32 %v1689_v23, 0.0 }
 0x124   :  { %v2039_v34 = vand.u32 4294901760, %v495_v29 }
 0x126   :  { %v2042_v39 = vsub.f32 %v495_v29, %v2039_v34 }
 0x128   :  { %v600_v40 = vand.u32 4294901760, %v2042_v39 }
 0x12a   :  { %v601_v41 = vsub.f32 %v2042_v39, %v600_v40  ;;  %1473 = vmatmul.mubr.f32.vlgmr.msra.gmra.mrb[2].mxu1 %v600_v40 }
 0x12b   :  { %1643 = vmatpush3.bf16.msra.mxu1 %v1963_v8  ;;  %1507 = vmatprep.mubr.msk.f32.mxu1 %vm1773_vm1, %v1772_v0 }
 0x12c   :  { %1644 = vmatprep.subr.bf16.mxu1 %v1775_v46  ;;  %v602_v42 = vand.u32 4294901760, %v601_v41 }
 0x12e   :  { %1368 = vmatmul.mubr.f32.vlgmr.msra.gmra.mrb[2].mxu0 %v602_v42 }
 0x12f   :  { %1571 = vmatpush3.bf16.msra.mxu0 %v1977_v21  ;;  %1646 = vmatpush3.bf16.msra.mxu1 %v1979_v22 }
 0x130   :  { %1572 = vmatprep.subr.bf16.mxu0 %v1775_v46  ;;  %1647 = vmatprep.subr.bf16.mxu1 %v1775_v46 }
 0x131   :  { %1402 = vmatprep.mubr.msk.f32.mxu0 %vm1773_vm1, %v1772_v0 }
 0x133   :  { %1574 = vmatpush3.bf16.msra.mxu0 %v1985_v37  ;;  %1649 = vmatpush3.bf16.msra.mxu1 %v1987_v38 }
 0x134   :  { %1575 = vmatprep.subr.bf16.mxu0 %v1775_v46  ;;  %1650 = vmatprep.subr.bf16.mxu1 %v1775_v46 }
 0x137   :  { %1577 = vmatpush3.bf16.msra.mxu0 %v1993_v45  ;;  %1652 = vmatpush3.bf16.msra.mxu1 %v1995_v52 }
 0x138   :  { %1578 = vmatprep.subr.bf16.mxu0 %v1775_v46  ;;  %1653 = vmatprep.subr.bf16.mxu1 %v1775_v46 }
 0x13b   :  { %1580 = vmatpush3.bf16.msra.mxu0 %v2001_v62  ;;  %1655 = vmatpush3.bf16.msra.mxu1 %v2003_v1 }
 0x13c   :  { %1581 = vmatprep.subr.bf16.mxu0 %v1775_v46  ;;  %1656 = vmatprep.subr.bf16.mxu1 %v1775_v46 }
 0x13f   :  { %1583 = vmatpush3.bf16.msra.mxu0 %v2009_v10  ;;  %1658 = vmatpush3.bf16.msra.mxu1 %v2011_v16 }
 0x140   :  { %1584 = vmatprep.subr.bf16.mxu0 %v1775_v46  ;;  %1659 = vmatprep.subr.bf16.mxu1 %v1775_v46 }
 0x143   :  { %1586 = vmatpush3.bf16.msra.mxu0 %v1585_v31  ;;  %1661 = vmatpush3.bf16.msra.mxu1 %v1660_v32 }
 0x144   :  { %1587 = vmatprep.subr.bf16.mxu0 %v1775_v46  ;;  %1662 = vmatprep.subr.bf16.mxu1 %v1775_v46 }
 0x147   :  { %1589 = vmatpush3.bf16.msra.mxu0 %v1588_v44  ;;  %1664 = vmatpush3.bf16.msra.mxu1 %v1663_v53 }
 0x148   :  { %1590 = vmatprep.subr.bf16.mxu0 %v1775_v46  ;;  %1665 = vmatprep.subr.bf16.mxu1 %v1775_v46 }
 0x14a   :  { %1508 = vmatmul.mubr.f32.vlgmr.msra.gmra.mrb[2].mxu1 %v2039_v34 }
 0x14b   :  { %1592 = vmatpush3.bf16.msra.mxu0 %v1591_v61  ;;  %1667 = vmatpush3.bf16.msra.mxu1 %v1905_v47 }
 0x14c   :  { %1593 = vmatprep.subr.bf16.mxu0 %v1775_v46  ;;  %1668 = vmatprep.subr.bf16.mxu1 %v1775_v46 }
 0x14d   :  { %1542 = vmatprep.mubr.msk.f32.mxu1 %vm1773_vm1, %v1772_v0 }
 0x14e   :  { %1403 = vmatmul.mubr.f32.vlgmr.msra.gmra.mrb[2].mxu0 %v2039_v34 }
 0x14f   :  { %1595 = vmatpush3.bf16.msra.mxu0 %v1594_v2  ;;  %1670 = vmatpush3.bf16.msra.mxu1 %v1911_v48 }
 0x150   :  { %1596 = vmatprep.subr.bf16.mxu0 %v1775_v46  ;;  %1671 = vmatprep.subr.bf16.mxu1 %v1775_v46 }
 0x151   :  { %1437 = vmatprep.mubr.msk.f32.mxu0 %vm1773_vm1, %v1772_v0  ;;  %v1158_v0 = vlaneseq }
 0x153   :  { %1598 = vmatpush3.bf16.msra.mxu0 %v1597_v3  ;;  %1673 = vmatpush3.bf16.msra.mxu1 %v1917_v49  ;;  %v1159_v28 = vshrl.u32 %v1158_v0, 7  ;;  %v1161_v21 = vand.u32 127, %v1158_v0 }
 0x154   :  { %1599 = vmatprep.subr.bf16.mxu0 %v1775_v46  ;;  %1674 = vmatprep.subr.bf16.mxu1 %v1775_v46 }
 0x155   :  { %vm1162_vm4 = vcmp.lt.s32.totalorder %v1159_v28, 2  ;;  %vm1181_vm5 = vcmp.lt.s32.totalorder %v1161_v21, 2 }
 0x157   :  { %1601 = vmatpush3.bf16.msra.mxu0 %v1600_v4  ;;  %1676 = vmatpush3.bf16.msra.mxu1 %v1925_v50 }
 0x158   :  { %1602 = vmatprep.subr.bf16.mxu0 %v1775_v46  ;;  %1677 = vmatprep.subr.bf16.mxu1 %v1775_v46 }
 0x15b   :  { %1604 = vmatpush3.bf16.msra.mxu0 %v1603_v6  ;;  %1679 = vmatpush3.bf16.msra.mxu1 %v1931_v51 }
 0x15c   :  { %1605 = vmatprep.subr.bf16.mxu0 %v1775_v46  ;;  %1680 = vmatprep.subr.bf16.mxu1 %v1775_v46 }
 0x15f   :  { %1607 = vmatpush3.bf16.msra.mxu0 %v1606_v7  ;;  %1682 = vmatpush3.bf16.msra.mxu1 %v1939_v56 }
 0x160   :  { %1608 = vmatprep.subr.bf16.mxu0 %v1775_v46  ;;  %1683 = vmatprep.subr.bf16.mxu1 %v1775_v46 }
 0x163   :  { %1610 = vmatpush3.bf16.msra.mxu0 %v1609_v9  ;;  %1685 = vmatpush3.bf16.msra.mxu1 %v1949_v63 }
 0x164   :  { %1611 = vmatprep.subr.bf16.mxu0 %v1775_v46  ;;  %1686 = vmatprep.subr.bf16.mxu1 %v1775_v46 }
 0x167   :  { %1613 = vmatpush3.bf16.msra.mxu0 %v1612_v17  ;;  %1688 = vmatpush3.bf16.msra.mxu1 %v1955_v5 }
 0x168   :  { %1614 = vmatprep.subr.bf16.mxu0 %v1775_v46 }
 0x16a   :  { %1543 = vmatmul.mubr.f32.vlgmr.msra.gmra.mrb[2].mxu1 %v2039_v34 }
 0x16b   :  { %1616 = vmatpush3.bf16.msra.mxu0 %v1615_v14 }
 0x16e   :  { %1438 = vmatmul.mubr.f32.vlgmr.msra.gmra.mrb[2].mxu0 %v2042_v39 }
 0x23d   :  { %v1154_v25 = vpop.f32.mrb[2].mxu1 }
 0x23e   :  { %v1544_v26 = vpop.f32.mrb[3].mxu1 }
 0x241   :  { %v859_v30 = vpop.f32.mrb[2].mxu0 }
 0x242   :  { %v1690_v33 = vadd.f32 %v1190_v27, %v859_v30  ;;  %v1439_v35 = vpop.f32.mrb[3].mxu0 }
 0x244   :  { %v1691_v36 = vadd.f32 %v1690_v33, %v1154_v25 }
 0x246   :  { %v1163_v47 = vsel %vm1162_vm4, %v1691_v36, -inf }
 0x247   :  { %v1164_v46 = vrot.slane %v1163_v47, 4 }
 0x249   :  { %v1165_v48 = vmax.f32 %v1163_v47, %v1164_v46 }
 0x24b   :  { %v1166_v49 = vrot.slane %v1165_v48, 2 }
 0x24d   :  { %v1167_v50 = vmax.f32 %v1165_v48, %v1166_v49 }
 0x24f   :  { %v1168_v51 = vrot.slane %v1167_v50, 1 }
 0x251   :  { %v1169_v56 = vmax.f32 %v1167_v50, %v1168_v51 }
 0x253   :  { %v1170_v57 = vsub.f32 %v1163_v47, %v1169_v56 }
 0x255   :  { %v1171_v58 = vmul.f32 1.442695, %v1170_v57 }
 0x257   :  { %1716 = vpow2.f32 %v1171_v58 }
 0x261   :  { %v1717_v63 = vpop.eup %1716 }
 0x262   :  { %v1173_v5 = vrot.slane %v1717_v63, 4 }
 0x264   :  { %v1174_v8 = vadd.f32 %v1717_v63, %v1173_v5 }
 0x266   :  { %v1175_v11 = vrot.slane %v1174_v8, 2 }
 0x268   :  { %v1176_v12 = vadd.f32 %v1175_v11, %v1174_v8 }
 0x26a   :  { %v1177_v13 = vrot.slane %v1176_v12, 1 }
 0x26c   :  { %v1178_v15 = vadd.f32 %v1177_v13, %v1176_v12 }
 0x26e   :  { %1718 = vrcp.f32 %v1178_v15 }
 0x278   :  { %v1719_v22 = vpop.eup %1718 }
 0x279   :  { %v1180_v37 = vmul.f32 %v1719_v22, %v1717_v63 }
 0x27b   :  { %v1182_v38 = vsel %vm1181_vm5, %v1180_v37, %v1691_v36 }
 0x27c   :  { %1183 = vst [vmem:[%s2133_s2] sm:$0xff] %v1182_v38 }
 0x27d   :  { %1188 = vsyncpa [#allocation4], 1 }
 0x27e   :  { %1189 = vsyncpa [#allocation6], 1 }

</bundles_post_ra>
